<compile_context>
chip_gen: v7x
topology: tpu7x:2x2x1
jax: 0.10.0
libtpu: 0.0.40
codegen_flags: <defaults>
</compile_context>

<pallas_src>
import math
from functools import partial

import jax
import jax.numpy as jnp
from jax import lax
from jax.experimental import pallas as pl
from jax.experimental.pallas import tpu as pltpu

BN_EPS = 1e-3
LANE = 128


def _round_up(x, m):
    return (x + m - 1) // m * m


def _pick_tile(total, candidates):
    for c in candidates:
        if total % c == 0:
            return c
    return total


def _fc_encoder_kernel(idx_ref, x_ref, w_ref, wcat_ref, bgb_ref, o_ref, acc_ref,
                       *, batch, n_cat):
    # grid = (Dout tiles, Din tiles); Din (k) is the reduction axis (last).
    k = pl.program_id(1)

    @pl.when(k == 0)
    def _():
        acc_ref[...] = jnp.zeros_like(acc_ref)

    # CustomConnected dense part: x @ (W_x * C_x).T, K-tiled, f32 accumulation on MXU.
    acc_ref[...] += jnp.dot(x_ref[...], w_ref[...],
                            preferred_element_type=jnp.float32)

    @pl.when(k == pl.num_programs(1) - 1)
    def _():
        # Covariate injection without materializing concat([x, one_hot]) in HBM:
        # build the one-hot in-register and add a tiny (B, n_cat) matmul.
        idx = idx_ref[...]                                            # (B, 1) int32
        onehot = (lax.broadcasted_iota(jnp.int32, (batch, n_cat), 1) == idx)
        onehot = onehot.astype(wcat_ref.dtype)
        h = acc_ref[...] + jnp.dot(onehot, wcat_ref[...],
                                   preferred_element_type=jnp.float32)
        h = h + bgb_ref[0:1, :]                                       # linear bias
        # BatchNorm1d, training-mode batch statistics (biased var, eps=1e-3).
        # Correct because the whole batch is in this block (per-feature stats).
        mean = jnp.mean(h, axis=0, keepdims=True)
        var = jnp.mean((h - mean) ** 2, axis=0, keepdims=True)
        h = (h - mean) * lax.rsqrt(var + BN_EPS)
        h = h * bgb_ref[1:2, :] + bgb_ref[2:3, :]
        h = jnp.maximum(h, 0.0)                                       # ReLU
        # TODO(synk): nn.Dropout(p=0.1) is stochastic; applied as identity (eval semantics).
        # TODO(synk): if the batch axis is ever tiled, switch BN to a sum/sumsq
        # accumulator with a pl.when finalize instead of per-tile statistics.
        o_ref[...] = h.astype(o_ref.dtype)


def fc_layers_encoder(x, batch_index, params, n_cat):
    """Forward of FCLayersEncoder(n_in, n_out=n_hidden, n_cat_list=[n_cat], n_layers=1)."""
    B, n_in = x.shape
    weight = params["weight"]                                  # (n_out, n_in + n_cat)
    conn = params["connections"].astype(weight.dtype)
    n_out = weight.shape[0]

    # Fold the static connection mask into the weight once, outside the kernel.
    w_eff = weight * conn
    w_x_t = w_eff[:, :n_in].T                                  # (n_in,  n_out)
    w_cat_t = w_eff[:, n_in:].T                                # (n_cat, n_out)

    din_p = _round_up(n_in, LANE)
    dout_p = _round_up(n_out, LANE)                            # lane-dense output

    # Zero-padded K rows / N cols contribute nothing; bf16 MXU inputs, f32 acc.
    x_p = jnp.zeros((B, din_p), jnp.bfloat16).at[:, :n_in].set(x.astype(jnp.bfloat16))
    w_x_p = jnp.zeros((din_p, dout_p), jnp.bfloat16).at[:n_in, :n_out].set(
        w_x_t.astype(jnp.bfloat16))
    w_cat_p = jnp.zeros((n_cat, dout_p), jnp.bfloat16).at[:, :n_out].set(
        w_cat_t.astype(jnp.bfloat16))
    # bias / bn_gamma / bn_beta packed into one (3, dout_p) array (single DMA stream).
    bgb = jnp.zeros((3, dout_p), jnp.float32)
    bgb = bgb.at[0, :n_out].set(params["bias"])
    bgb = bgb.at[1, :n_out].set(params["bn_gamma"])
    bgb = bgb.at[2, :n_out].set(params["bn_beta"])

    idx = batch_index.reshape(B, 1).astype(jnp.int32)

    TN = _pick_tile(dout_p, (256, 128))                        # 256-aligned when possible
    TK = _pick_tile(din_p, (512, 256, 128))
    grid = (dout_p // TN, din_p // TK)

    # Rough VMEM budget: double-buffered inputs + output + f32 accumulator, with headroom.
    tile_bytes = 2 * (B * TK * 2 + TK * TN * 2 + n_cat * TN * 2 + 3 * TN * 4
                      + B * 4 + B * TN * 4) + B * TN * 4
    vmem_limit = int(min(max(4 * tile_bytes, 8 << 20), 48 << 20))

    kernel = partial(_fc_encoder_kernel, batch=B, n_cat=n_cat)

    out_p = pl.pallas_call(
        kernel,
        out_shape=jax.ShapeDtypeStruct((B, dout_p), jnp.float32),
        grid=grid,
        in_specs=[
            pl.BlockSpec((B, 1), lambda n, k: (0, 0)),         # batch_index
            pl.BlockSpec((B, TK), lambda n, k: (0, k)),        # x tile
            pl.BlockSpec((TK, TN), lambda n, k: (k, n)),       # (W_x * C).T tile
            pl.BlockSpec((n_cat, TN), lambda n, k: (0, n)),    # (W_cat * C).T tile
            pl.BlockSpec((3, TN), lambda n, k: (0, n)),        # bias / gamma / beta
        ],
        out_specs=pl.BlockSpec((B, TN), lambda n, k: (0, n)),
        scratch_shapes=[pltpu.VMEM((B, TN), jnp.float32)],
        compiler_params=pltpu.CompilerParams(
            dimension_semantics=("parallel", "arbitrary"),
            vmem_limit_bytes=vmem_limit),
    )(idx, x_p, w_x_p, w_cat_p, bgb)

    return out_p[:, :n_out]


def _reference(x, batch_index, params, n_cat):
    """Pure-JAX reference with the same bf16 matmul-input precision (sanity check)."""
    B = x.shape[0]
    one_hot_cat = jax.nn.one_hot(batch_index.reshape(B).astype(jnp.int32),
                                 n_cat, dtype=jnp.float32)
    x_cat = jnp.concatenate([x, one_hot_cat], axis=-1)
    w_eff = params["weight"] * params["connections"].astype(jnp.float32)
    h = jnp.dot(x_cat.astype(jnp.bfloat16), w_eff.T.astype(jnp.bfloat16),
                preferred_element_type=jnp.float32) + params["bias"][None, :]
    mean = jnp.mean(h, axis=0, keepdims=True)
    var = jnp.mean((h - mean) ** 2, axis=0, keepdims=True)
    h = (h - mean) * lax.rsqrt(var + BN_EPS)
    h = h * params["bn_gamma"][None, :] + params["bn_beta"][None, :]
    return jnp.maximum(h, 0.0)


def init_params(key, n_in, n_out, n_cat):
    """Deterministic synthetic parameters matching the module's shapes/init scheme."""
    din = n_in + n_cat                                 # weight is (n_out, n_in + cat_dim)
    kw, kb = jax.random.split(key)
    # kaiming_uniform_(a=sqrt(5)) on (n_out, din) -> U(-1/sqrt(fan_in), 1/sqrt(fan_in))
    bound = 1.0 / math.sqrt(din)
    weight = jax.random.uniform(kw, (n_out, din), jnp.float32, -bound, bound)
    bias = jax.random.uniform(kb, (n_out,), jnp.float32, -bound, bound)
    # Connection mask (module default is all-ones; use a nontrivial pattern so the
    # W * connections masking is actually exercised).
    rows = jnp.arange(n_out)[:, None]
    cols = jnp.arange(din)[None, :]
    connections = ((rows + cols) % 5 != 0).astype(jnp.int32)
    return {
        "weight": weight,
        "bias": bias,
        "connections": connections,
        "bn_gamma": jnp.ones((n_out,), jnp.float32),   # BatchNorm1d affine init
        "bn_beta": jnp.zeros((n_out,), jnp.float32),
    }


if __name__ == "__main__":
    n_in, n_out, n_cat, batch = 16, 32, 4, 8
    key = jax.random.PRNGKey(0)
    kx, ki, kp = jax.random.split(key, 3)
    x = jax.random.normal(kx, (batch, n_in), jnp.float32)
    batch_index = jax.random.randint(ki, (batch, 1), 0, n_cat)
    params = init_params(kp, n_in, n_out, n_cat)

    out = fc_layers_encoder(x, batch_index, params, n_cat)
    jax.block_until_ready(out)
    assert out.shape == (batch, n_out)
    assert jnp.all(jnp.isfinite(out))

    ref = _reference(x, batch_index, params, n_cat)
    assert jnp.allclose(out, ref, atol=2e-3, rtol=2e-3), float(jnp.max(jnp.abs(out - ref)))
    print("KERNEL_OK")
</pallas_src>

<mosaic_0001>
module attributes {stable_mosaic.version = 11 : i64} {
  func.func @_fc_encoder_kernel(%arg0: i32, %arg1: i32, %arg2: memref<8x1xi32, #tpu.memory_space<vmem>>, %arg3: memref<8x128xbf16, #tpu.memory_space<vmem>>, %arg4: memref<128x128xbf16, #tpu.memory_space<vmem>>, %arg5: memref<4x128xbf16, #tpu.memory_space<vmem>>, %arg6: memref<3x128xf32, #tpu.memory_space<vmem>>, %arg7: memref<8x128xf32, #tpu.memory_space<vmem>>, %arg8: memref<8x128xf32, #tpu.memory_space<vmem>>) attributes {dimension_semantics = [#tpu.dimension_semantics<parallel>, #tpu.dimension_semantics<arbitrary>], iteration_bounds = array<i64: 1, 1>, scalar_prefetch = 0 : i64, scratch_operands = 1 : i64, tpu.core_type = #tpu.core_type<tc>, window_params = [{pipeline_mode = #tpu.pipeline_mode<synchronous>, transform_indices = @transform_0, window_bounds = array<i64: 8, 1>}, {transform_indices = @transform_1, window_bounds = array<i64: 8, 128>}, {transform_indices = @transform_2, window_bounds = array<i64: 128, 128>}, {transform_indices = @transform_3, window_bounds = array<i64: 4, 128>}, {transform_indices = @transform_4, window_bounds = array<i64: 3, 128>}, {transform_indices = @transform_5, window_bounds = array<i64: 8, 128>}]} {
    %c0_i32 = arith.constant 0 : i32
    %0 = arith.cmpi eq, %arg1, %c0_i32 : i32
    %1 = arith.extui %0 : i1 to i32
    %c0_i32_0 = arith.constant 0 : i32
    %2 = arith.cmpi ne, %1, %c0_i32_0 : i32
    scf.if %2 {
      %cst_10 = arith.constant 0.000000e+00 : f32
      %12 = vector.broadcast %cst_10 : f32 to vector<8x128xf32>
      %c0_11 = arith.constant 0 : index
      %c0_12 = arith.constant 0 : index
      %13 = vector.load %arg8[%c0_11, %c0_12] : memref<8x128xf32, #tpu.memory_space<vmem>>, vector<8x128xf32>
      tpu.vector_store %arg8[%c0_11, %c0_12], %12 {strides = array<i32>} : memref<8x128xf32, #tpu.memory_space<vmem>>, vector<8x128xf32>,
    } else {
    }
    %c0 = arith.constant 0 : index
    %c0_1 = arith.constant 0 : index
    %3 = vector.load %arg8[%c0, %c0_1] : memref<8x128xf32, #tpu.memory_space<vmem>>, vector<8x128xf32>
    %c0_2 = arith.constant 0 : index
    %c0_3 = arith.constant 0 : index
    %4 = vector.load %arg3[%c0_2, %c0_3] : memref<8x128xbf16, #tpu.memory_space<vmem>>, vector<8x128xbf16>
    %c0_4 = arith.constant 0 : index
    %c0_5 = arith.constant 0 : index
    %5 = vector.load %arg4[%c0_4, %c0_5] : memref<128x128xbf16, #tpu.memory_space<vmem>>, vector<128x128xbf16>
    %cst = arith.constant dense<0.000000e+00> : vector<8x128xf32>
    %6 = tpu.matmul %4, %5, %cst {dimension_numbers = #tpu.dot_dimension_numbers<[1], [0], [0], [1], [0, 0, 1, 1], [], []>} : vector<8x128xbf16>, vector<128x128xbf16>, vector<8x128xf32> -> vector<8x128xf32>
    %7 = arith.addf %3, %6 : vector<8x128xf32>
    %c0_6 = arith.constant 0 : index
    %c0_7 = arith.constant 0 : index
    %8 = vector.load %arg8[%c0_6, %c0_7] : memref<8x128xf32, #tpu.memory_space<vmem>>, vector<8x128xf32>
    tpu.vector_store %arg8[%c0_6, %c0_7], %7 {strides = array<i32>} : memref<8x128xf32, #tpu.memory_space<vmem>>, vector<8x128xf32>,
    %c0_i32_8 = arith.constant 0 : i32
    %9 = arith.cmpi eq, %arg1, %c0_i32_8 : i32
    %10 = arith.extui %9 : i1 to i32
    %c0_i32_9 = arith.constant 0 : i32
    %11 = arith.cmpi ne, %10, %c0_i32_9 : i32
    scf.if %11 {
      %c0_10 = arith.constant 0 : index
      %c0_11 = arith.constant 0 : index
      %12 = vector.load %arg2[%c0_10, %c0_11] : memref<8x1xi32, #tpu.memory_space<vmem>>, vector<8x1xi32>
      %13 = tpu.iota {dimensions = array<i32: 1>} : vector<8x4xi32>
      %14 = vector.broadcast %12 : vector<8x1xi32> to vector<8x4xi32>
      %15 = arith.cmpi eq, %13, %14 : vector<8x4xi32>
      %16 = arith.extui %15 : vector<8x4xi1> to vector<8x4xi32>
      %17 = arith.sitofp %16 : vector<8x4xi32> to vector<8x4xf32>
      %18 = arith.truncf %17 : vector<8x4xf32> to vector<8x4xbf16>
      %c0_12 = arith.constant 0 : index
      %c0_13 = arith.constant 0 : index
      %19 = vector.load %arg8[%c0_12, %c0_13] : memref<8x128xf32, #tpu.memory_space<vmem>>, vector<8x128xf32>
      %c0_14 = arith.constant 0 : index
      %c0_15 = arith.constant 0 : index
      %20 = vector.load %arg5[%c0_14, %c0_15] : memref<4x128xbf16, #tpu.memory_space<vmem>>, vector<4x128xbf16>
      %cst_16 = arith.constant dense<0.000000e+00> : vector<8x128xf32>
      %21 = tpu.matmul %18, %20, %cst_16 {dimension_numbers = #tpu.dot_dimension_numbers<[1], [0], [0], [1], [0, 0, 1, 1], [], []>} : vector<8x4xbf16>, vector<4x128xbf16>, vector<8x128xf32> -> vector<8x128xf32>
      %22 = arith.addf %19, %21 : vector<8x128xf32>
      %c0_17 = arith.constant 0 : index
      %c0_18 = arith.constant 0 : index
      %23 = vector.load %arg6[%c0_17, %c0_18] : memref<3x128xf32, #tpu.memory_space<vmem>>, vector<1x128xf32>
      %24 = vector.broadcast %23 : vector<1x128xf32> to vector<8x128xf32>
      %25 = arith.addf %22, %24 : vector<8x128xf32>
      %cst_19 = arith.constant dense<0.000000e+00> : vector<128xf32>
      %26 = vector.multi_reduction <add>, %25, %cst_19 [0] : vector<8x128xf32> to vector<128xf32>
      %27 = vector.shape_cast %26 : vector<128xf32> to vector<1x128xf32>
      %cst_20 = arith.constant 8.000000e+00 : f32
      %28 = vector.broadcast %cst_20 : f32 to vector<1x128xf32>
      %29 = arith.divf %27, %28 : vector<1x128xf32>
      %30 = vector.broadcast %29 : vector<1x128xf32> to vector<8x128xf32>
      %31 = arith.subf %25, %30 : vector<8x128xf32>
      %32 = arith.mulf %31, %31 : vector<8x128xf32>
      %cst_21 = arith.constant dense<0.000000e+00> : vector<128xf32>
      %33 = vector.multi_reduction <add>, %32, %cst_21 [0] : vector<8x128xf32> to vector<128xf32>
      %34 = vector.shape_cast %33 : vector<128xf32> to vector<1x128xf32>
      %cst_22 = arith.constant 8.000000e+00 : f32
      %35 = vector.broadcast %cst_22 : f32 to vector<1x128xf32>
      %36 = arith.divf %34, %35 : vector<1x128xf32>
      %37 = vector.broadcast %29 : vector<1x128xf32> to vector<8x128xf32>
      %38 = arith.subf %25, %37 : vector<8x128xf32>
      %cst_23 = arith.constant 1.000000e-03 : f32
      %39 = vector.broadcast %cst_23 : f32 to vector<1x128xf32>
      %40 = arith.addf %36, %39 : vector<1x128xf32>
      %41 = math.rsqrt %40 : vector<1x128xf32>
      %42 = vector.broadcast %41 : vector<1x128xf32> to vector<8x128xf32>
      %43 = arith.mulf %38, %42 : vector<8x128xf32>
      %c1 = arith.constant 1 : index
      %c0_24 = arith.constant 0 : index
      %44 = vector.load %arg6[%c1, %c0_24] : memref<3x128xf32, #tpu.memory_space<vmem>>, vector<1x128xf32>
      %45 = vector.broadcast %44 : vector<1x128xf32> to vector<8x128xf32>
      %46 = arith.mulf %43, %45 : vector<8x128xf32>
      %c2 = arith.constant 2 : index
      %c0_25 = arith.constant 0 : index
      %47 = vector.load %arg6[%c2, %c0_25] : memref<3x128xf32, #tpu.memory_space<vmem>>, vector<1x128xf32>
      %48 = vector.broadcast %47 : vector<1x128xf32> to vector<8x128xf32>
      %49 = arith.addf %46, %48 : vector<8x128xf32>
      %cst_26 = arith.constant 0.000000e+00 : f32
      %50 = vector.broadcast %cst_26 : f32 to vector<8x128xf32>
      %51 = arith.maximumf %49, %50 : vector<8x128xf32>
      %c0_27 = arith.constant 0 : index
      %c0_28 = arith.constant 0 : index
      %52 = vector.load %arg7[%c0_27, %c0_28] : memref<8x128xf32, #tpu.memory_space<vmem>>, vector<8x128xf32>
      tpu.vector_store %arg7[%c0_27, %c0_28], %51 {strides = array<i32>} : memref<8x128xf32, #tpu.memory_space<vmem>>, vector<8x128xf32>,
    } else {
    }
    return
  }
  func.func @transform_0(%arg0: i32, %arg1: i32) -> (i32, i32) {
    %c0_i32 = arith.constant 0 : i32
    %c0_i32_0 = arith.constant 0 : i32
    %c0_i32_1 = arith.constant 0 : i32
    return %c0_i32, %c0_i32_0 : i32, i32
  }
  func.func @transform_1(%arg0: i32, %arg1: i32) -> (i32, i32) {
    %c0_i32 = arith.constant 0 : i32
    %c0_i32_0 = arith.constant 0 : i32
    return %c0_i32, %arg1 : i32, i32
  }
  func.func @transform_2(%arg0: i32, %arg1: i32) -> (i32, i32) {
    %c0_i32 = arith.constant 0 : i32
    return %arg1, %arg0 : i32, i32
  }
  func.func @transform_3(%arg0: i32, %arg1: i32) -> (i32, i32) {
    %c0_i32 = arith.constant 0 : i32
    %c0_i32_0 = arith.constant 0 : i32
    return %c0_i32, %arg0 : i32, i32
  }
  func.func @transform_4(%arg0: i32, %arg1: i32) -> (i32, i32) {
    %c0_i32 = arith.constant 0 : i32
    %c0_i32_0 = arith.constant 0 : i32
    return %c0_i32, %arg0 : i32, i32
  }
  func.func @transform_5(%arg0: i32, %arg1: i32) -> (i32, i32) {
    %c0_i32 = arith.constant 0 : i32
    %c0_i32_0 = arith.constant 0 : i32
    return %c0_i32, %arg0 : i32, i32
  }
}

</mosaic_0001>

<bundles_post_ra>
// kernel: tpu_custom_call.1
= control target key start
LH: loop header
LB: loop body
LE: loop exit
PB: predicated region body
PF: predicated region fallthrough
CT: control target
= control target key end

     0   :  { %10 = vsyncpa [#allocation4], 0  ;;  %s463_s0 = inlined_call_operand.vmem [shape: s32[8,1], index: 0, kind: input, shape index: {}]   ;;  %s464_s1 = inlined_call_operand.vmem [shape: bf16[8,128], index: 1, kind: input, shape index: {}]   ;;  %s465_s2 = inlined_call_operand.hbm [shape: bf16[128,128], index: 2, kind: input, shape index: {}]   ;;  %s466_s3 = inlined_call_operand.vmem [shape: bf16[4,128], index: 3, kind: input, shape index: {}]   ;;  %s467_s4 = inlined_call_operand.vmem [shape: f32[3,128], index: 4, kind: input, shape index: {}]   ;;  %s468_s5 = inlined_call_operand.hbm [shape: f32[8,128], index: 5, kind: output, shape index: {}]  }
   0x1   :  { %11 = vsyncpa [#allocation5], 0  ;;  %s384_s18 = smov [#allocation3]   ;;  %s336_s22 = scalar_lea.hbm %s465_s2, 1024 }
   0x2   :  { %s21_s19 = sshll.u32 %s384_s18, 4  ;;  %p337_p0 = scmp.ne.s32.totalorder %s465_s2, %s336_s22  ;;  %s22_s19 = int_to_ptr.vmem [resolvable:$true] %s21_s19 }
   0x3   :  { %p340_p1 = scmp.lt.u32.totalorder %s336_s22, %s465_s2 }
   0x5   :  { %p342_p2 = pnand %p340_p1, %p337_p0 }
   0x7   :  { %345 = shalt.err (!%p342_p2)
}
   0x8   :  { %s346_s27 = scalar_lea.vmem %s22_s19, 1024  ;;  %p351_p4 = scmp.lt.s32.totalorder %s22_s19, %s22_s19 }
   0x9   :  { %p347_p3 = scmp.ne.s32.totalorder %s22_s19, %s346_s27  ;;  %p352_p5 = scmp.lt.s32.totalorder %s346_s27, %s346_s27 }
   0xb   :  { %p353_p6 = por %p352_p5, %p351_p4 }
   0xd   :  { %p354_p7 = pnand %p353_p6, %p347_p3 }
   0xf   :  { %357 = shalt.err (!%p354_p7)
}
  0x10   :  { %s385_s28 = smov 64   ;;  %s386_s29 = smov 4  }
  0x11   :  { %27 = dma.hbm_to_vmem [thread:$0]  %s465_s2, 1024, %s22_s19, [#allocation4], %s385_s28, %s385_s28, %s386_s29  }
  0x12   :  { %380 = dma.done.wait [#allocation4], 1024  }
  0x13   :  { %381 = vsyncadd [#allocation4], 4294966272  ;;  %v387_v0 = vmov 0   ;;  %v388_v1 = vmov 0.0   ;;  %v152_v2 = vld [vmem:[%s463_s0] sm:$0xff]  ;;  %v326_v3 = vld [vmem:[#allocation3] sm:$0xff]   ;;  %v153_v14 = vlaneseq }
  0x14   :  { %325 = vset.pattern.permute.xlu0 %v387_v0  ;;  %292 = vmatprep.subr.bf16.mxu0 %v388_v1  ;;  %vm389_vm0 = vmmov 0   ;;  %v327_v4 = vld [vmem:[#allocation3 + $0x8] sm:$0xff]   ;;  %vm168_vm1 = vcmask 1041408   ;;  %v328_v5 = vld [vmem:[#allocation3 + $0x10] sm:$0xff]   ;;  %v163_v6 = vld [vmem:[%s466_s3] sm:$0x3] }
  0x15   :  { %312 = vmatprep.subr.bf16.mxu1 %v388_v1  ;;  %156 = vperm.xlu0 %325, %v152_v2   ;;  %v170_v7 = vsel %vm168_vm1, %v163_v6, 0  ;;  %v329_v8 = vld [vmem:[#allocation3 + $0x18] sm:$0xff]   ;;  %v330_v9 = vld [vmem:[#allocation3 + $0x20] sm:$0xff]   ;;  %v331_v10 = vld [vmem:[#allocation3 + $0x28] sm:$0xff]   ;;  %v154_v15 = vand.u32 127, %v153_v14  ;;  %vm164_vm3 = vcmask 31744  }
  0x16   :  { %308 = vmatprep.mubr.msk.bf16.mxu0 %vm389_vm0, %v388_v1  ;;  %314 = vmatprep.mubr.msk.bf16.mxu1 %vm389_vm0, %v388_v1  ;;  %v332_v11 = vld [vmem:[#allocation3 + $0x30] sm:$0xff]   ;;  %v333_v12 = vld [vmem:[#allocation3 + $0x38] sm:$0xff]   ;;  %s390_s15 = smov [#allocation6]  }
  0x17   :  { %293 = vmatpush3.bf16.msra.mxu0 %v326_v3  ;;  %313 = vmatpush3.bf16.msra.mxu1 %v170_v7  ;;  %v42_v13 = vld [vmem:[%s464_s1] sm:$0xf]  ;;  %s259_s16 = sshll.u32 %s390_s15, 4  ;;  %s260_s16 = int_to_ptr.vmem [resolvable:$true] %s259_s16 }
  0x18   :  { %294 = vmatprep.subr.bf16.mxu0 %v388_v1  ;;  %v278_v24 = vld [vmem:[%s467_s4] ss:$0 sm:$0xff]  ;;  %v279_v48 = vld [vmem:[%s467_s4 + $0x1] ss:$0 sm:$0xff]  ;;  %v280_v50 = vld [vmem:[%s467_s4 + $0x2] ss:$0 sm:$0xff]  ;;  %p363_p9 = scmp.lt.s32.totalorder %s260_s16, %s260_s16 }
  0x19   :  { %s358_s17 = scalar_lea.vmem %s260_s16, 128 }
  0x1a   :  { %p359_p8 = scmp.ne.s32.totalorder %s260_s16, %s358_s17  ;;  %p364_p10 = scmp.lt.s32.totalorder %s358_s17, %s358_s17 }
  0x1b   :  { %295 = vmatpush3.bf16.msra.mxu0 %v327_v4 }
  0x1c   :  { %296 = vmatprep.subr.bf16.mxu0 %v388_v1  ;;  %p365_p11 = por %p364_p10, %p363_p9 }
  0x1e   :  { %p366_p12 = pnand %p365_p11, %p359_p8 }
  0x1f   :  { %297 = vmatpush3.bf16.msra.mxu0 %v328_v5 }
  0x20   :  { %298 = vmatprep.subr.bf16.mxu0 %v388_v1 }
  0x23   :  { %299 = vmatpush3.bf16.msra.mxu0 %v329_v8 }
  0x24   :  { %300 = vmatprep.subr.bf16.mxu0 %v388_v1 }
  0x27   :  { %301 = vmatpush3.bf16.msra.mxu0 %v330_v9 }
  0x28   :  { %302 = vmatprep.subr.bf16.mxu0 %v388_v1 }
  0x2b   :  { %303 = vmatpush3.bf16.msra.mxu0 %v331_v10 }
  0x2c   :  { %304 = vmatprep.subr.bf16.mxu0 %v388_v1 }
  0x2f   :  { %305 = vmatpush3.bf16.msra.mxu0 %v332_v11 }
  0x30   :  { %306 = vmatprep.subr.bf16.mxu0 %v388_v1 }
  0x33   :  { %307 = vmatpush3.bf16.msra.mxu0 %v333_v12 }
  0x36   :  { %309 = vmatmul.mubr.bf16.vlgmr.msra.gmra.mrb[0].mxu0 %v42_v13 }
  0x94   :  { %v157_v16 = vpop.permute.xlu0 %156 }
  0x95   :  { %vm158_vm2 = vcmp.eq.s32.totalorder %v154_v15, %v157_v16 }
  0x96   :  { %v276_v17 = vsel %vm158_vm2, 1.0, %v388_v1 }
  0x97   :  { %v161_v18 = vpack.c.bf16 %v276_v17, %v276_v17 }
  0x99   :  { %315 = vmatmul.mubr.msk.bf16.vlgmr.msra.gmra.mrb[0].mxu1 %vm164_vm3, %v161_v18 }
 0x109   :  { %v141_v19 = vpop.f32.mrb[0].mxu0 }
 0x10a   :  { %v310_v20 = vpop.f32.mrb[1].mxu0 }
 0x10b   :  { %v144_v21 = vpop.f32.mrb[2].mxu0 }
 0x10c   :  { %v311_v22 = vpop.f32.mrb[3].mxu0 }
 0x16c   :  { %v206_v23 = vpop.f32.mrb[0].mxu1 }
 0x16d   :  { %v212_v25 = vadd.f32 %v206_v23, %v141_v19  ;;  %v316_v26 = vpop.f32.mrb[1].mxu1 }
 0x16e   :  { %v209_v27 = vpop.f32.mrb[2].mxu1 }
 0x16f   :  { %v218_v28 = vadd.f32 %v278_v24, %v212_v25  ;;  %v317_v29 = vpop.f32.mrb[3].mxu1 }
 0x171   :  { %v219_v30 = vrot.slane %v218_v28, 4 }
 0x173   :  { %v220_v31 = vadd.f32 %v219_v30, %v218_v28 }
 0x175   :  { %v221_v32 = vrot.slane %v220_v31, 2 }
 0x177   :  { %v222_v33 = vadd.f32 %v221_v32, %v220_v31 }
 0x179   :  { %v223_v34 = vrot.slane %v222_v33, 1 }
 0x17b   :  { %v224_v35 = vadd.f32 %v223_v34, %v222_v33 }
 0x17d   :  { %v226_v36 = vmul.f32 0.125, %v224_v35 }
 0x17f   :  { %v227_v37 = vsub.f32 %v218_v28, %v226_v36 }
 0x181   :  { %v228_v38 = vmul.f32 %v227_v37, %v227_v37 }
 0x183   :  { %v229_v39 = vrot.slane %v228_v38, 4 }
 0x185   :  { %v230_v40 = vadd.f32 %v229_v39, %v228_v38 }
 0x187   :  { %v231_v41 = vrot.slane %v230_v40, 2 }
 0x189   :  { %v232_v42 = vadd.f32 %v231_v41, %v230_v40 }
 0x18b   :  { %v233_v43 = vrot.slane %v232_v42, 1 }
 0x18d   :  { %v234_v44 = vadd.f32 %v233_v43, %v232_v42 }
 0x18f   :  { %v235_v45 = vmul.f32 0.125, %v234_v44 }
 0x191   :  { %v236_v46 = vadd.f32 0.001, %v235_v45 }
 0x193   :  { %334 = vrsqrt.f32 %v236_v46 }
 0x19d   :  { %v335_v47 = vpop.eup %334 }
 0x19e   :  { %v238_v49 = vmul.f32 %v335_v47, %v227_v37 }
 0x1a0   :  { %v244_v51 = vmul.f32 %v279_v48, %v238_v49 }
 0x1a2   :  { %v250_v52 = vadd.f32 %v280_v50, %v244_v51 }
 0x1a4   :  { %v251_v53 = vmax.f32 %v250_v52, 0.0 }
 0x1a6   :  { %252 = vst [vmem:[#allocation6] sm:$0xff] %v251_v53 }
 0x1a7   :  { %369 = shalt.err (!%p366_p12)
}
 0x1a8   :  { %s370_s20 = scalar_lea.hbm %s468_s5, 128 }
 0x1a9   :  { %p371_p13 = scmp.ne.s32.totalorder %s468_s5, %s370_s20  ;;  %p374_p0 = scmp.lt.u32.totalorder %s370_s20, %s468_s5 }
 0x1ab   :  { %p376_p1 = pnand %p374_p0, %p371_p13 }
 0x1ad   :  { %379 = shalt.err (!%p376_p1)
}
 0x1ae   :  { %262 = dma.vmem_to_hbm [thread:$0]  %s260_s16, 128, %s468_s5, [#allocation5]  }
 0x1af   :  { %382 = dma.done.wait [#allocation5], 128  }
 0x1b0   :  { %383 = vsyncadd [#allocation5], 4294967168 }
 0x1b1   :  { %266 = vsyncpa [#allocation4], 1 }
 0x1b2   :  { %267 = vsyncpa [#allocation5], 1 }

</bundles_post_ra>
